<compile_context>
chip_gen: v5e
topology: v5e:2x2
jax: 0.10.0
libtpu: 0.0.40
codegen_flags: <defaults>
</compile_context>

<pallas_src>
import jax
import jax.numpy as jnp
from jax.experimental import pallas as pl
from jax.experimental.pallas import tpu as pltpu

FEAT = 10                        # hidden width of the MLP
SUBLANES = 8                     # sublane rows per I/O block (f32 vreg height)
PACK_ROWS, PACK_COLS = 96, 128   # packed-parameter block (sublane x lane)
# sublane offsets inside the packed block (8-aligned => vreg-aligned f32)
ROW_W2, ROW_W1, ROW_B1, ROW_B2, ROW_W3, ROW_B3 = 0, 16, 32, 48, 64, 80


def _round_up(x, m):
    return ((x + m - 1) // m) * m


def mlp_kernel(x_ref, p_ref, o_ref, z_ref):
    """x_ref/o_ref: (8, tb) batch on sublanes+lanes.  p_ref: (96, 128) packed
    params (constant block index -> VMEM-resident).  z_ref: (8, tb) f32 scratch
    used to assemble the pre-sigmoid logits densely."""
    tb = x_ref.shape[1]
    x = x_ref[...]                                           # (8, tb)

    w2 = p_ref[ROW_W2:ROW_W2 + FEAT, 0:FEAT]                 # (10, 10) fc2 [out, in]
    b3 = p_ref[ROW_B3:ROW_B3 + 1, 0:1]                       # (1, 1)
    w2_bf = w2.astype(jnp.bfloat16)                          # single MXU pass

    # Hoisted lane-broadcasts of the small vectors: once per grid step, not
    # once per sublane row (JAX does not CSE broadcast_in_dim inside loops).
    w1b = jnp.broadcast_to(p_ref[ROW_W1:ROW_W1 + FEAT, 0:1], (FEAT, tb))
    b1b = jnp.broadcast_to(p_ref[ROW_B1:ROW_B1 + FEAT, 0:1], (FEAT, tb))
    b2b = jnp.broadcast_to(p_ref[ROW_B2:ROW_B2 + FEAT, 0:1], (FEAT, tb))
    w3b = jnp.broadcast_to(p_ref[ROW_W3:ROW_W3 + FEAT, 0:1], (FEAT, tb))

    # Static unroll over the 8 sublane rows of the batch block.
    for r in range(SUBLANES):
        xr = x[r:r + 1, :]                                   # (1, tb)
        # fc1 (in=1): VPU broadcast outer product, exact f32.
        h = jnp.maximum(w1b * xr + b1b, 0.0)                 # (10, tb)
        # fc2 (10x10): the only matmul -> one bf16 MXU pass, f32 accumulation.
        h = jnp.dot(w2_bf, h.astype(jnp.bfloat16),
                    preferred_element_type=jnp.float32) + b2b
        h = jnp.maximum(h, 0.0)                              # (10, tb)
        # fc3 (out=1): 10-wide sublane reduction (XLU), exact f32.
        z_ref[r:r + 1, :] = jnp.sum(w3b * h, axis=0, keepdims=True)

    # Dense tail: bias, sigmoid (one tanh EUP push) and store on the full
    # (8, tb) block instead of per-row (1, tb) slices.
    z = z_ref[...] + b3
    o_ref[...] = (0.5 * jnp.tanh(0.5 * z) + 0.5).astype(o_ref.dtype)


def pack_params(params):
    """Pack PyTorch-convention params (wN: (out, in), bN: (out,)) into one
    (96, 128) f32 block.  Vector params sit in lane 0 at 8-aligned sublane
    offsets; the fc2 matrix sits at [0:10, 0:10]."""
    p = jnp.zeros((PACK_ROWS, PACK_COLS), jnp.float32)
    p = p.at[ROW_W2:ROW_W2 + FEAT, 0:FEAT].set(params["w2"])       # (10, 10)
    p = p.at[ROW_W1:ROW_W1 + FEAT, 0].set(params["w1"][:, 0])      # fc1 weight
    p = p.at[ROW_B1:ROW_B1 + FEAT, 0].set(params["b1"])            # fc1 bias
    p = p.at[ROW_B2:ROW_B2 + FEAT, 0].set(params["b2"])            # fc2 bias
    p = p.at[ROW_W3:ROW_W3 + FEAT, 0].set(params["w3"][0, :])      # fc3 weight
    p = p.at[ROW_B3, 0].set(params["b3"][0])                       # fc3 bias
    return p


def simple_mlp_forward(x, packed, *, tb_max=16 * 1024):
    """x: (B, 1) float32 (PyTorch layout).  packed: (96, 128) f32 params.
    Returns (B, 1) float32 with SimpleMLP.forward semantics.

    tb_max is the lane width of one (8, tb) block: 16384 lanes = 128K batch
    elements (~1 MiB HBM traffic, ~12 MiB peak VMEM) per grid step -- safe on
    v5e/v6e (128 MiB VMEM) and v7x (64 MiB/TC)."""
    B = x.shape[0]
    L = pl.cdiv(B, SUBLANES)                       # lanes once batch is (8, L)
    # Aim for ~8 grid steps (keeps both v7x TensorCores busy and overlaps DMA
    # with compute) while capping the block size; tb is a multiple of 128.
    tb = min(tb_max, max(128, _round_up(pl.cdiv(L, 8), 128)))
    Lp = _round_up(L, tb)
    nb = Lp // tb
    Bp = SUBLANES * Lp

    # Layout plumbing: batch -> (8 sublanes, Lp lanes).  Pad only when needed.
    # (For a bandwidth-critical path, hand x in pre-laid-out as (8, L) or fuse
    # the pad/reshape into the operand via CompilerParams(allow_input_fusion).)
    xf = x.reshape(-1).astype(jnp.float32)
    if Bp != B:
        xf = jnp.pad(xf, (0, Bp - B))
    xt = xf.reshape(SUBLANES, Lp)

    out = pl.pallas_call(
        mlp_kernel,
        out_shape=jax.ShapeDtypeStruct((SUBLANES, Lp), jnp.float32),
        grid_spec=pltpu.PrefetchScalarGridSpec(
            num_scalar_prefetch=0,
            grid=(nb,),
            in_specs=[
                # batch tile: (8, tb), marching along the lane axis
                pl.BlockSpec((SUBLANES, tb), lambda i: (0, i)),
                # packed params: constant block index -> DMA'd once, resident
                pl.BlockSpec((PACK_ROWS, PACK_COLS), lambda i: (0, 0)),
            ],
            out_specs=pl.BlockSpec((SUBLANES, tb), lambda i: (0, i)),
            scratch_shapes=[pltpu.VMEM((SUBLANES, tb), jnp.float32)],
        ),
        compiler_params=pltpu.CompilerParams(
            # batch axis is embarrassingly parallel -> split across v7x's 2 TCs
            dimension_semantics=("parallel",),
            # big tiles exceed the 16/32 MiB scoped defaults; 48 MiB still fits
            # inside v7x's 64 MiB per-TensorCore VMEM.
            vmem_limit_bytes=48 * 1024 * 1024,
        ),
    )(xt, packed)

    return out.reshape(Bp)[:B].reshape(B, 1)


def init_params(key):
    """PyTorch nn.Linear default init: U(-1/sqrt(fan_in), 1/sqrt(fan_in)),
    stored in PyTorch convention (W: (out, in), b: (out,))."""
    def linear(k, fan_in, fan_out):
        kw, kb = jax.random.split(k)
        bound = 1.0 / jnp.sqrt(fan_in)
        w = jax.random.uniform(kw, (fan_out, fan_in), jnp.float32, -bound, bound)
        b = jax.random.uniform(kb, (fan_out,), jnp.float32, -bound, bound)
        return w, b

    k1, k2, k3 = jax.random.split(key, 3)
    w1, b1 = linear(k1, 1, 10)
    w2, b2 = linear(k2, 10, 10)
    w3, b3 = linear(k3, 10, 1)
    return {"w1": w1, "b1": b1, "w2": w2, "b2": b2, "w3": w3, "b3": b3}


def mirrored_reference(x, p):
    """Pure-JAX reference mirroring the kernel's numerics exactly:
    f32 elementwise fc1/fc3, bf16-operand fc2 with f32 accumulation, tanh-form
    sigmoid.  Used for the tight correctness check."""
    h1 = jnp.maximum(x * p["w1"][:, 0] + p["b1"], 0.0)                 # (B, 10)
    h2 = jnp.dot(h1.astype(jnp.bfloat16), p["w2"].T.astype(jnp.bfloat16),
                 preferred_element_type=jnp.float32) + p["b2"]
    h2 = jnp.maximum(h2, 0.0)
    z = jnp.sum(h2 * p["w3"][0, :], axis=-1, keepdims=True) + p["b3"]
    return 0.5 * jnp.tanh(0.5 * z) + 0.5


def reference_forward(x, p):
    """Full-f32 SimpleMLP.forward spec (PyTorch semantics)."""
    hp = jax.lax.Precision.HIGHEST
    h1 = jnp.maximum(jnp.dot(x, p["w1"].T, precision=hp) + p["b1"], 0.0)
    h2 = jnp.maximum(jnp.dot(h1, p["w2"].T, precision=hp) + p["b2"], 0.0)
    return jax.nn.sigmoid(jnp.dot(h2, p["w3"].T, precision=hp) + p["b3"])


if __name__ == "__main__":
    key = jax.random.PRNGKey(0)
    kx, kp = jax.random.split(key)
    batch = 2000   # small; exercises the ragged-pad path and a 2-step grid
    x = jax.random.normal(kx, (batch, 1), jnp.float32)
    params = init_params(kp)
    packed = pack_params(params)

    out = simple_mlp_forward(x, packed)
    jax.block_until_ready(out)
    assert out.shape == (batch, 1)

    # Tight check against a reference that mirrors the kernel's numerics.
    ref_tight = mirrored_reference(x, params)
    assert jnp.allclose(out, ref_tight, atol=1e-5, rtol=1e-5), (
        float(jnp.max(jnp.abs(out - ref_tight))))

    # Spec-level check against full-f32 SimpleMLP.forward; the bound covers the
    # deliberate bf16 rounding of the fc2 operands (single MXU pass).
    ref_spec = reference_forward(x, params)
    assert float(jnp.max(jnp.abs(out - ref_spec))) < 3e-2

    print("KERNEL_OK")
</pallas_src>

<mosaic_0001>
module attributes {stable_mosaic.version = 11 : i64} {
  func.func @mlp_kernel(%arg0: i32, %arg1: memref<8x128xf32, #tpu.memory_space<vmem>>, %arg2: memref<96x128xf32, #tpu.memory_space<vmem>>, %arg3: memref<8x128xf32, #tpu.memory_space<vmem>>, %arg4: memref<8x128xf32, #tpu.memory_space<vmem>>) attributes {dimension_semantics = [#tpu.dimension_semantics<parallel>], iteration_bounds = array<i64: 2>, scalar_prefetch = 0 : i64, scratch_operands = 1 : i64, tpu.core_type = #tpu.core_type<tc>, window_params = [{transform_indices = @transform_0, window_bounds = array<i64: 8, 128>}, {pipeline_mode = #tpu.pipeline_mode<synchronous>, transform_indices = @transform_1, window_bounds = array<i64: 96, 128>}, {transform_indices = @transform_2, window_bounds = array<i64: 8, 128>}]} {
    %c0 = arith.constant 0 : index
    %c0_0 = arith.constant 0 : index
    %0 = vector.load %arg1[%c0, %c0_0] : memref<8x128xf32, #tpu.memory_space<vmem>>, vector<8x128xf32>
    %c0_1 = arith.constant 0 : index
    %c0_2 = arith.constant 0 : index
    %1 = vector.load %arg2[%c0_1, %c0_2] : memref<96x128xf32, #tpu.memory_space<vmem>>, vector<10x10xf32>
    %c80 = arith.constant 80 : index
    %c0_3 = arith.constant 0 : index
    %2 = vector.load %arg2[%c80, %c0_3] : memref<96x128xf32, #tpu.memory_space<vmem>>, vector<1x1xf32>
    %3 = arith.truncf %1 : vector<10x10xf32> to vector<10x10xbf16>
    %c16 = arith.constant 16 : index
    %c0_4 = arith.constant 0 : index
    %4 = vector.load %arg2[%c16, %c0_4] : memref<96x128xf32, #tpu.memory_space<vmem>>, vector<10x1xf32>
    %5 = vector.shape_cast %4 : vector<10x1xf32> to vector<10x1xf32>
    %6 = vector.broadcast %5 : vector<10x1xf32> to vector<10x128xf32>
    %c32 = arith.constant 32 : index
    %c0_5 = arith.constant 0 : index
    %7 = vector.load %arg2[%c32, %c0_5] : memref<96x128xf32, #tpu.memory_space<vmem>>, vector<10x1xf32>
    %8 = vector.shape_cast %7 : vector<10x1xf32> to vector<10x1xf32>
    %9 = vector.broadcast %8 : vector<10x1xf32> to vector<10x128xf32>
    %c48 = arith.constant 48 : index
    %c0_6 = arith.constant 0 : index
    %10 = vector.load %arg2[%c48, %c0_6] : memref<96x128xf32, #tpu.memory_space<vmem>>, vector<10x1xf32>
    %11 = vector.shape_cast %10 : vector<10x1xf32> to vector<10x1xf32>
    %12 = vector.broadcast %11 : vector<10x1xf32> to vector<10x128xf32>
    %c64 = arith.constant 64 : index
    %c0_7 = arith.constant 0 : index
    %13 = vector.load %arg2[%c64, %c0_7] : memref<96x128xf32, #tpu.memory_space<vmem>>, vector<10x1xf32>
    %14 = vector.shape_cast %13 : vector<10x1xf32> to vector<10x1xf32>
    %15 = vector.broadcast %14 : vector<10x1xf32> to vector<10x128xf32>
    %16 = vector.extract_strided_slice %0 {offsets = [0, 0], sizes = [1, 128], strides = [1, 1]} : vector<8x128xf32> to vector<1x128xf32>
    %17 = vector.broadcast %16 : vector<1x128xf32> to vector<10x128xf32>
    %18 = arith.mulf %6, %17 : vector<10x128xf32>
    %19 = arith.addf %18, %9 : vector<10x128xf32>
    %cst = arith.constant 0.000000e+00 : f32
    %20 = vector.broadcast %cst : f32 to vector<10x128xf32>
    %21 = arith.maximumf %19, %20 : vector<10x128xf32>
    %22 = arith.truncf %21 : vector<10x128xf32> to vector<10x128xbf16>
    %cst_8 = arith.constant dense<0.000000e+00> : vector<10x128xf32>
    %23 = tpu.matmul %3, %22, %cst_8 {dimension_numbers = #tpu.dot_dimension_numbers<[1], [0], [0], [1], [0, 0, 1, 1], [], []>} : vector<10x10xbf16>, vector<10x128xbf16>, vector<10x128xf32> -> vector<10x128xf32>
    %24 = arith.addf %23, %12 : vector<10x128xf32>
    %cst_9 = arith.constant 0.000000e+00 : f32
    %25 = vector.broadcast %cst_9 : f32 to vector<10x128xf32>
    %26 = arith.maximumf %24, %25 : vector<10x128xf32>
    %27 = arith.mulf %15, %26 : vector<10x128xf32>
    %cst_10 = arith.constant dense<0.000000e+00> : vector<128xf32>
    %28 = vector.multi_reduction <add>, %27, %cst_10 [0] : vector<10x128xf32> to vector<128xf32>
    %29 = vector.shape_cast %28 : vector<128xf32> to vector<1x128xf32>
    %c0_11 = arith.constant 0 : index
    %c0_12 = arith.constant 0 : index
    %30 = vector.load %arg4[%c0_11, %c0_12] : memref<8x128xf32, #tpu.memory_space<vmem>>, vector<1x128xf32>
    tpu.vector_store %arg4[%c0_11, %c0_12], %29 {strides = array<i32>} : memref<8x128xf32, #tpu.memory_space<vmem>>, vector<1x128xf32>,
    %31 = vector.extract_strided_slice %0 {offsets = [1, 0], sizes = [1, 128], strides = [1, 1]} : vector<8x128xf32> to vector<1x128xf32>
    %32 = vector.broadcast %31 : vector<1x128xf32> to vector<10x128xf32>
    %33 = arith.mulf %6, %32 : vector<10x128xf32>
    %34 = arith.addf %33, %9 : vector<10x128xf32>
    %cst_13 = arith.constant 0.000000e+00 : f32
    %35 = vector.broadcast %cst_13 : f32 to vector<10x128xf32>
    %36 = arith.maximumf %34, %35 : vector<10x128xf32>
    %37 = arith.truncf %36 : vector<10x128xf32> to vector<10x128xbf16>
    %cst_14 = arith.constant dense<0.000000e+00> : vector<10x128xf32>
    %38 = tpu.matmul %3, %37, %cst_14 {dimension_numbers = #tpu.dot_dimension_numbers<[1], [0], [0], [1], [0, 0, 1, 1], [], []>} : vector<10x10xbf16>, vector<10x128xbf16>, vector<10x128xf32> -> vector<10x128xf32>
    %39 = arith.addf %38, %12 : vector<10x128xf32>
    %cst_15 = arith.constant 0.000000e+00 : f32
    %40 = vector.broadcast %cst_15 : f32 to vector<10x128xf32>
    %41 = arith.maximumf %39, %40 : vector<10x128xf32>
    %42 = arith.mulf %15, %41 : vector<10x128xf32>
    %cst_16 = arith.constant dense<0.000000e+00> : vector<128xf32>
    %43 = vector.multi_reduction <add>, %42, %cst_16 [0] : vector<10x128xf32> to vector<128xf32>
    %44 = vector.shape_cast %43 : vector<128xf32> to vector<1x128xf32>
    %c1 = arith.constant 1 : index
    %c0_17 = arith.constant 0 : index
    %45 = vector.load %arg4[%c1, %c0_17] : memref<8x128xf32, #tpu.memory_space<vmem>>, vector<1x128xf32>
    tpu.vector_store %arg4[%c1, %c0_17], %44 {strides = array<i32>} : memref<8x128xf32, #tpu.memory_space<vmem>>, vector<1x128xf32>,
    %46 = vector.extract_strided_slice %0 {offsets = [2, 0], sizes = [1, 128], strides = [1, 1]} : vector<8x128xf32> to vector<1x128xf32>
    %47 = vector.broadcast %46 : vector<1x128xf32> to vector<10x128xf32>
    %48 = arith.mulf %6, %47 : vector<10x128xf32>
    %49 = arith.addf %48, %9 : vector<10x128xf32>
    %cst_18 = arith.constant 0.000000e+00 : f32
    %50 = vector.broadcast %cst_18 : f32 to vector<10x128xf32>
    %51 = arith.maximumf %49, %50 : vector<10x128xf32>
    %52 = arith.truncf %51 : vector<10x128xf32> to vector<10x128xbf16>
    %cst_19 = arith.constant dense<0.000000e+00> : vector<10x128xf32>
    %53 = tpu.matmul %3, %52, %cst_19 {dimension_numbers = #tpu.dot_dimension_numbers<[1], [0], [0], [1], [0, 0, 1, 1], [], []>} : vector<10x10xbf16>, vector<10x128xbf16>, vector<10x128xf32> -> vector<10x128xf32>
    %54 = arith.addf %53, %12 : vector<10x128xf32>
    %cst_20 = arith.constant 0.000000e+00 : f32
    %55 = vector.broadcast %cst_20 : f32 to vector<10x128xf32>
    %56 = arith.maximumf %54, %55 : vector<10x128xf32>
    %57 = arith.mulf %15, %56 : vector<10x128xf32>
    %cst_21 = arith.constant dense<0.000000e+00> : vector<128xf32>
    %58 = vector.multi_reduction <add>, %57, %cst_21 [0] : vector<10x128xf32> to vector<128xf32>
    %59 = vector.shape_cast %58 : vector<128xf32> to vector<1x128xf32>
    %c2 = arith.constant 2 : index
    %c0_22 = arith.constant 0 : index
    %60 = vector.load %arg4[%c2, %c0_22] : memref<8x128xf32, #tpu.memory_space<vmem>>, vector<1x128xf32>
    tpu.vector_store %arg4[%c2, %c0_22], %59 {strides = array<i32>} : memref<8x128xf32, #tpu.memory_space<vmem>>, vector<1x128xf32>,
    %61 = vector.extract_strided_slice %0 {offsets = [3, 0], sizes = [1, 128], strides = [1, 1]} : vector<8x128xf32> to vector<1x128xf32>
    %62 = vector.broadcast %61 : vector<1x128xf32> to vector<10x128xf32>
    %63 = arith.mulf %6, %62 : vector<10x128xf32>
    %64 = arith.addf %63, %9 : vector<10x128xf32>
    %cst_23 = arith.constant 0.000000e+00 : f32
    %65 = vector.broadcast %cst_23 : f32 to vector<10x128xf32>
    %66 = arith.maximumf %64, %65 : vector<10x128xf32>
    %67 = arith.truncf %66 : vector<10x128xf32> to vector<10x128xbf16>
    %cst_24 = arith.constant dense<0.000000e+00> : vector<10x128xf32>
    %68 = tpu.matmul %3, %67, %cst_24 {dimension_numbers = #tpu.dot_dimension_numbers<[1], [0], [0], [1], [0, 0, 1, 1], [], []>} : vector<10x10xbf16>, vector<10x128xbf16>, vector<10x128xf32> -> vector<10x128xf32>
    %69 = arith.addf %68, %12 : vector<10x128xf32>
    %cst_25 = arith.constant 0.000000e+00 : f32
    %70 = vector.broadcast %cst_25 : f32 to vector<10x128xf32>
    %71 = arith.maximumf %69, %70 : vector<10x128xf32>
    %72 = arith.mulf %15, %71 : vector<10x128xf32>
    %cst_26 = arith.constant dense<0.000000e+00> : vector<128xf32>
    %73 = vector.multi_reduction <add>, %72, %cst_26 [0] : vector<10x128xf32> to vector<128xf32>
    %74 = vector.shape_cast %73 : vector<128xf32> to vector<1x128xf32>
    %c3 = arith.constant 3 : index
    %c0_27 = arith.constant 0 : index
    %75 = vector.load %arg4[%c3, %c0_27] : memref<8x128xf32, #tpu.memory_space<vmem>>, vector<1x128xf32>
    tpu.vector_store %arg4[%c3, %c0_27], %74 {strides = array<i32>} : memref<8x128xf32, #tpu.memory_space<vmem>>, vector<1x128xf32>,
    %76 = vector.extract_strided_slice %0 {offsets = [4, 0], sizes = [1, 128], strides = [1, 1]} : vector<8x128xf32> to vector<1x128xf32>
    %77 = vector.broadcast %76 : vector<1x128xf32> to vector<10x128xf32>
    %78 = arith.mulf %6, %77 : vector<10x128xf32>
    %79 = arith.addf %78, %9 : vector<10x128xf32>
    %cst_28 = arith.constant 0.000000e+00 : f32
    %80 = vector.broadcast %cst_28 : f32 to vector<10x128xf32>
    %81 = arith.maximumf %79, %80 : vector<10x128xf32>
    %82 = arith.truncf %81 : vector<10x128xf32> to vector<10x128xbf16>
    %cst_29 = arith.constant dense<0.000000e+00> : vector<10x128xf32>
    %83 = tpu.matmul %3, %82, %cst_29 {dimension_numbers = #tpu.dot_dimension_numbers<[1], [0], [0], [1], [0, 0, 1, 1], [], []>} : vector<10x10xbf16>, vector<10x128xbf16>, vector<10x128xf32> -> vector<10x128xf32>
    %84 = arith.addf %83, %12 : vector<10x128xf32>
    %cst_30 = arith.constant 0.000000e+00 : f32
    %85 = vector.broadcast %cst_30 : f32 to vector<10x128xf32>
    %86 = arith.maximumf %84, %85 : vector<10x128xf32>
    %87 = arith.mulf %15, %86 : vector<10x128xf32>
    %cst_31 = arith.constant dense<0.000000e+00> : vector<128xf32>
    %88 = vector.multi_reduction <add>, %87, %cst_31 [0] : vector<10x128xf32> to vector<128xf32>
    %89 = vector.shape_cast %88 : vector<128xf32> to vector<1x128xf32>
    %c4 = arith.constant 4 : index
    %c0_32 = arith.constant 0 : index
    %90 = vector.load %arg4[%c4, %c0_32] : memref<8x128xf32, #tpu.memory_space<vmem>>, vector<1x128xf32>
    tpu.vector_store %arg4[%c4, %c0_32], %89 {strides = array<i32>} : memref<8x128xf32, #tpu.memory_space<vmem>>, vector<1x128xf32>,
    %91 = vector.extract_strided_slice %0 {offsets = [5, 0], sizes = [1, 128], strides = [1, 1]} : vector<8x128xf32> to vector<1x128xf32>
    %92 = vector.broadcast %91 : vector<1x128xf32> to vector<10x128xf32>
    %93 = arith.mulf %6, %92 : vector<10x128xf32>
    %94 = arith.addf %93, %9 : vector<10x128xf32>
    %cst_33 = arith.constant 0.000000e+00 : f32
    %95 = vector.broadcast %cst_33 : f32 to vector<10x128xf32>
    %96 = arith.maximumf %94, %95 : vector<10x128xf32>
    %97 = arith.truncf %96 : vector<10x128xf32> to vector<10x128xbf16>
    %cst_34 = arith.constant dense<0.000000e+00> : vector<10x128xf32>
    %98 = tpu.matmul %3, %97, %cst_34 {dimension_numbers = #tpu.dot_dimension_numbers<[1], [0], [0], [1], [0, 0, 1, 1], [], []>} : vector<10x10xbf16>, vector<10x128xbf16>, vector<10x128xf32> -> vector<10x128xf32>
    %99 = arith.addf %98, %12 : vector<10x128xf32>
    %cst_35 = arith.constant 0.000000e+00 : f32
    %100 = vector.broadcast %cst_35 : f32 to vector<10x128xf32>
    %101 = arith.maximumf %99, %100 : vector<10x128xf32>
    %102 = arith.mulf %15, %101 : vector<10x128xf32>
    %cst_36 = arith.constant dense<0.000000e+00> : vector<128xf32>
    %103 = vector.multi_reduction <add>, %102, %cst_36 [0] : vector<10x128xf32> to vector<128xf32>
    %104 = vector.shape_cast %103 : vector<128xf32> to vector<1x128xf32>
    %c5 = arith.constant 5 : index
    %c0_37 = arith.constant 0 : index
    %105 = vector.load %arg4[%c5, %c0_37] : memref<8x128xf32, #tpu.memory_space<vmem>>, vector<1x128xf32>
    tpu.vector_store %arg4[%c5, %c0_37], %104 {strides = array<i32>} : memref<8x128xf32, #tpu.memory_space<vmem>>, vector<1x128xf32>,
    %106 = vector.extract_strided_slice %0 {offsets = [6, 0], sizes = [1, 128], strides = [1, 1]} : vector<8x128xf32> to vector<1x128xf32>
    %107 = vector.broadcast %106 : vector<1x128xf32> to vector<10x128xf32>
    %108 = arith.mulf %6, %107 : vector<10x128xf32>
    %109 = arith.addf %108, %9 : vector<10x128xf32>
    %cst_38 = arith.constant 0.000000e+00 : f32
    %110 = vector.broadcast %cst_38 : f32 to vector<10x128xf32>
    %111 = arith.maximumf %109, %110 : vector<10x128xf32>
    %112 = arith.truncf %111 : vector<10x128xf32> to vector<10x128xbf16>
    %cst_39 = arith.constant dense<0.000000e+00> : vector<10x128xf32>
    %113 = tpu.matmul %3, %112, %cst_39 {dimension_numbers = #tpu.dot_dimension_numbers<[1], [0], [0], [1], [0, 0, 1, 1], [], []>} : vector<10x10xbf16>, vector<10x128xbf16>, vector<10x128xf32> -> vector<10x128xf32>
    %114 = arith.addf %113, %12 : vector<10x128xf32>
    %cst_40 = arith.constant 0.000000e+00 : f32
    %115 = vector.broadcast %cst_40 : f32 to vector<10x128xf32>
    %116 = arith.maximumf %114, %115 : vector<10x128xf32>
    %117 = arith.mulf %15, %116 : vector<10x128xf32>
    %cst_41 = arith.constant dense<0.000000e+00> : vector<128xf32>
    %118 = vector.multi_reduction <add>, %117, %cst_41 [0] : vector<10x128xf32> to vector<128xf32>
    %119 = vector.shape_cast %118 : vector<128xf32> to vector<1x128xf32>
    %c6 = arith.constant 6 : index
    %c0_42 = arith.constant 0 : index
    %120 = vector.load %arg4[%c6, %c0_42] : memref<8x128xf32, #tpu.memory_space<vmem>>, vector<1x128xf32>
    tpu.vector_store %arg4[%c6, %c0_42], %119 {strides = array<i32>} : memref<8x128xf32, #tpu.memory_space<vmem>>, vector<1x128xf32>,
    %121 = vector.extract_strided_slice %0 {offsets = [7, 0], sizes = [1, 128], strides = [1, 1]} : vector<8x128xf32> to vector<1x128xf32>
    %122 = vector.broadcast %121 : vector<1x128xf32> to vector<10x128xf32>
    %123 = arith.mulf %6, %122 : vector<10x128xf32>
    %124 = arith.addf %123, %9 : vector<10x128xf32>
    %cst_43 = arith.constant 0.000000e+00 : f32
    %125 = vector.broadcast %cst_43 : f32 to vector<10x128xf32>
    %126 = arith.maximumf %124, %125 : vector<10x128xf32>
    %127 = arith.truncf %126 : vector<10x128xf32> to vector<10x128xbf16>
    %cst_44 = arith.constant dense<0.000000e+00> : vector<10x128xf32>
    %128 = tpu.matmul %3, %127, %cst_44 {dimension_numbers = #tpu.dot_dimension_numbers<[1], [0], [0], [1], [0, 0, 1, 1], [], []>} : vector<10x10xbf16>, vector<10x128xbf16>, vector<10x128xf32> -> vector<10x128xf32>
    %129 = arith.addf %128, %12 : vector<10x128xf32>
    %cst_45 = arith.constant 0.000000e+00 : f32
    %130 = vector.broadcast %cst_45 : f32 to vector<10x128xf32>
    %131 = arith.maximumf %129, %130 : vector<10x128xf32>
    %132 = arith.mulf %15, %131 : vector<10x128xf32>
    %cst_46 = arith.constant dense<0.000000e+00> : vector<128xf32>
    %133 = vector.multi_reduction <add>, %132, %cst_46 [0] : vector<10x128xf32> to vector<128xf32>
    %134 = vector.shape_cast %133 : vector<128xf32> to vector<1x128xf32>
    %c7 = arith.constant 7 : index
    %c0_47 = arith.constant 0 : index
    %135 = vector.load %arg4[%c7, %c0_47] : memref<8x128xf32, #tpu.memory_space<vmem>>, vector<1x128xf32>
    tpu.vector_store %arg4[%c7, %c0_47], %134 {strides = array<i32>} : memref<8x128xf32, #tpu.memory_space<vmem>>, vector<1x128xf32>,
    %c0_48 = arith.constant 0 : index
    %c0_49 = arith.constant 0 : index
    %136 = vector.load %arg4[%c0_48, %c0_49] : memref<8x128xf32, #tpu.memory_space<vmem>>, vector<8x128xf32>
    %137 = vector.broadcast %2 : vector<1x1xf32> to vector<8x128xf32>
    %138 = arith.addf %136, %137 : vector<8x128xf32>
    %cst_50 = arith.constant 5.000000e-01 : f32
    %139 = vector.broadcast %cst_50 : f32 to vector<8x128xf32>
    %140 = arith.mulf %139, %138 : vector<8x128xf32>
    %141 = math.tanh %140 : vector<8x128xf32>
    %cst_51 = arith.constant 5.000000e-01 : f32
    %142 = vector.broadcast %cst_51 : f32 to vector<8x128xf32>
    %143 = arith.mulf %142, %141 : vector<8x128xf32>
    %cst_52 = arith.constant 5.000000e-01 : f32
    %144 = vector.broadcast %cst_52 : f32 to vector<8x128xf32>
    %145 = arith.addf %143, %144 : vector<8x128xf32>
    %c0_53 = arith.constant 0 : index
    %c0_54 = arith.constant 0 : index
    %146 = vector.load %arg3[%c0_53, %c0_54] : memref<8x128xf32, #tpu.memory_space<vmem>>, vector<8x128xf32>
    tpu.vector_store %arg3[%c0_53, %c0_54], %145 {strides = array<i32>} : memref<8x128xf32, #tpu.memory_space<vmem>>, vector<8x128xf32>,
    return
  }
  func.func @transform_0(%arg0: i32) -> (i32, i32) {
    %c0_i32 = arith.constant 0 : i32
    %c0_i32_0 = arith.constant 0 : i32
    return %c0_i32, %arg0 : i32, i32
  }
  func.func @transform_1(%arg0: i32) -> (i32, i32) {
    %c0_i32 = arith.constant 0 : i32
    %c0_i32_0 = arith.constant 0 : i32
    %c0_i32_1 = arith.constant 0 : i32
    return %c0_i32, %c0_i32_0 : i32, i32
  }
  func.func @transform_2(%arg0: i32) -> (i32, i32) {
    %c0_i32 = arith.constant 0 : i32
    %c0_i32_0 = arith.constant 0 : i32
    return %c0_i32, %arg0 : i32, i32
  }
}

</mosaic_0001>

<bundles_post_ra>
// kernel: tpu_custom_call.1
= control target key start
LH: loop header
LB: loop body
LE: loop exit
PB: predicated region body
PF: predicated region fallthrough
CT: control target
= control target key end

     0   :  { %7 = vsyncpa [#allocation4], 0  ;;  %s1095_s0 = inlined_call_operand.hbm [shape: f32[8,256], index: 0, kind: input, shape index: {}]   ;;  %s1096_s1 = inlined_call_operand.hbm [shape: f32[96,128], index: 1, kind: input, shape index: {}]   ;;  %s1097_s2 = inlined_call_operand.hbm [shape: f32[8,256], index: 2, kind: output, shape index: {}]  }
   0x1   :  { %9 = vsyncpa [#allocation4 + $0x1], 0 }
   0x2   :  { %10 = vsyncpa [#allocation7], 0 }
   0x3   :  { %11 = vsyncpa [#allocation5], 0 }
   0x4   :  { %13 = vsyncpa [#allocation5 + $0x1], 0  ;;  %s889_s9 = smov 0   ;;  %s891_s10 = smov 0  }
   0x5   :  { %s893_s11 = smov 0   ;;  %s895_s12 = smov 0  }
   0x6 LB: > { %s108_s15 = sshll.u32 %s1096_s1, 4  ;;  %s913_s16 = sadd.s32 4294967295, %s868_s12   ;;  %s868_s12 = sphi %s895_s12, %s1107_s12   ;;  %s864_s11 = sphi %s893_s11, %s1106_s11   ;;  %s860_s10 = sphi %s891_s10, %s1105_s10   ;;  %s856_s9 = sphi %s889_s9, %s1104_s9   ;;  %s109_s15 = int_to_ptr.hbm [resolvable:$true] %s108_s15 }
   0x7   : > { %p650_p0 = scmp.ge.s32.totalorder %s868_s12, 1  ;;  %p40_p1 = scmp.eq.s32.totalorder %s913_s16, 0 }
   0x8   : > { %p97_p2 = scmp.lt.s32.totalorder %s868_s12, 3  ;;  %s870_s18 = smov [#allocation6]  }
   0x9   : > { %s110_s19 = sshll.u32 %s870_s18, 4  ;;  %s871_s20 = smov 128   ;;  %s111_s19 = int_to_ptr.vmem [resolvable:$true] %s110_s19 }
   0xa   : > { %p918_p3 = pnand %p650_p0, %p97_p2  ;;  %s872_s21 = smov 8  }
   0xb   : > { %s649_s22 = sadd.s32 4294967294, %s868_s12   ;;  %s929_s23 = sadd.s32 1, %s868_s12  }
   0xc   : > { %p681_p4 = pneg %p918_p3  ;;  %s26_s24 = sadd.s32 1, %s864_s11 }
   0xd   : > { %s23_s25 = ssub.s32 %s868_s12, %s929_s23  ;;  %p33_p7 = scmp.ne.s32.totalorder %s864_s11, %s860_s10 }
   0xe   : > { %p682_p6 = pnand %p681_p4, %p40_p1  ;;  %p24_p8 = scmp.eq.s32.totalorder %s23_s25, 0 }
   0xf   : > { %p34_p9 = scmp.eq.s32.totalorder %s868_s12, 0  ;;  %p39_p10 = scmp.ne.s32.totalorder %s860_s10, %s856_s9 }
  0x10   : > { %684 = dma.hbm_to_vmem [thread:$0]  (!%p682_p6), %s109_s15, 1536, %s111_s19, [#allocation7], %s871_s20, %s871_s20, %s872_s21  }
  0x11   : > { %p84_p11 = scmp.eq.s32.totalorder %s913_s16, 1  ;;  %p945_p12 = por %p40_p1, %p39_p10 }
  0x12   : > { %s941_s26 = scalar_select %p24_p8, %s864_s11, %s26_s24  }
  0x13   : > { %p949_p13 = por %p84_p11, %p33_p7  ;;  %p90_p0 = scmp.eq.s32.totalorder %s649_s22, 1 }
  0x14   : > { %p35_p2 = por %p34_p9, %p33_p7  ;;  %s124_s29 = sand.u32 1, %s864_s11  }
  0x15   : > { %p954_p4 = por %p90_p0, %p39_p10  ;;  %p694_p6 = scmp.lt.s32.totalorder %s868_s12, 2 }
  0x16   : > { %s653_s3 = sshll.u32 %s124_s29, 3  ;;  %s654_s4 = sshll.u32 %s868_s12, 3 }
  0x17   : > { %s132_s7 = scalar_lea.hbm %s1095_s0, %s654_s4  ;;  %s128_s13 = scalar_lea.vmem [#allocation3], %s653_s3 }
  0x18   : > { %s134_s8 = sshll.u32 %s132_s7, 4  ;;  %s136_s14 = sshll.u32 %s128_s13, 4  ;;  %s135_s8 = int_to_ptr.hbm [resolvable:$true] %s134_s8  ;;  %s137_s14 = int_to_ptr.vmem [resolvable:$true] %s136_s14 }
  0x19   : > { %p963_p8 = pnand %p694_p6, %p35_p2  ;;  %s125_s18 = scalar_lea.sflag [#allocation4], %s124_s29 }
  0x1a   : > { %s768_s19 = sshra.s32 %s135_s8, 4  ;;  %s775_s24 = scalar_lea.hbm %s1095_s0, 16  ;;  %s769_s19 = int_to_ptr.hbm [resolvable:$true] %s768_s19 }
  0x1b   : > { %s770_s20 = scalar_lea.hbm %s769_s19, 8  ;;  %p772_p9 = pneg %p963_p8 }
  0x1c   : > { %p771_p7 = scmp.ne.s32.totalorder %s769_s19, %s770_s20  ;;  %p776_p0 = scmp.lt.s32.totalorder %s769_s19, %s1095_s0 }
  0x1d   : > { %p777_p2 = scmp.lt.s32.totalorder %s775_s24, %s770_s20 }
  0x1e   : > { %p773_p10 = pnand %p772_p9, %p771_p7 }
  0x1f   : > { %p778_p6 = por %p777_p2, %p776_p0 }
  0x20   : > { %p774_p11 = pneg %p773_p10 }
  0x22   : > { %p779_p5 = pnand %p778_p6, %p774_p11 }
  0x24   : > { %782 = shalt.err (!%p779_p5)
}
  0x25   : > { %688 = dma.hbm_to_vmem [thread:$0]  (!%p963_p8), %s135_s8, 128, %s137_s14, %s125_s18  }
  0x26   : > { %145 = sbr.rel (%p918_p3) target bundleno = 391 (0x187), region = 28  ;;  %s980_s29 = sand.u32 (!%p918_p3), 1, %s860_s10  }
  0x27   : > { %s656_s4 = sshll.u32 (!%p918_p3), %s980_s29, 3  ;;  %s148_s5 = scalar_lea.sflag (!%p918_p3), [#allocation4], %s980_s29 }
  0x28   : > { %s151_s6 = scalar_lea.vmem (!%p918_p3), [#allocation3], %s656_s4 }
  0x2b   : > { %843 = dma.done.wait (%p945_p12), %s148_s5, 128  }
  0x2c   : > { %845 = vsyncadd (%p945_p12), %s148_s5, 4294967168 }
  0x2d   : > { %847 = dma.done.wait (%p40_p1), [#allocation7], 1536  }
  0x2e   : > { %849 = vsyncadd (%p40_p1), [#allocation7], 4294965760  ;;  %v873_v0 = vmov 0   ;;  %v196_v1 = vld [vmem:[#allocation6 + $0x20] sm:$0xff]  ;;  %v184_v2 = vld [vmem:[#allocation6 + $0x10] sm:$0xff]  ;;  %vm244_vm0 = vcmask 1044480  }
  0x2f   : > { %734 = vset.pattern.permute.xlu1 %v873_v0  ;;  %733 = vset.pattern.permute.xlu0 %v873_v0  ;;  %v197_v3 = vld [vmem:[#allocation6 + $0x28] sm:$0x3]  ;;  %v185_v4 = vld [vmem:[#allocation6 + $0x18] sm:$0x3]  ;;  %v220_v5 = vld [vmem:[#allocation6 + $0x40] sm:$0xff]  ;;  %vm240_vm1 = vcmask 80896  }
  0x30   : > { %735 = vset.pattern.permute.xlu2 %v873_v0  ;;  %200 = vperm.xlu1 %734, %v196_v1   ;;  %v221_v6 = vld [vmem:[#allocation6 + $0x48] sm:$0x3]  ;;  %v179_v7 = vld [vmem:[%s151_s6] sm:$0xff]  ;;  %v180_v30 = vld [vmem:[#allocation6] sm:$0xff]  ;;  %vm266_vm2 = vcmask 1041408   ;;  %s668_s27 = sshll.u32 %s913_s16, 3 }
  0x31   : > { %188 = vperm.xlu0 %733, %v184_v2   ;;  %v232_v8 = vperm.slane %v179_v7, 0  ;;  %v276_v9 = vperm.slane %v179_v7, 1  ;;  %v314_v10 = vperm.slane %v179_v7, 2  ;;  %v352_v11 = vperm.slane %v179_v7, 3  ;;  %v181_v31 = vld [vmem:[#allocation6 + $0x8] sm:$0x3]  ;;  %s564_s13 = scalar_lea.hbm %s1097_s2, %s668_s27 }
  0x32   : > { %v390_v12 = vperm.slane %v179_v7, 4  ;;  %v428_v13 = vperm.slane %v179_v7, 5  ;;  %v466_v14 = vperm.slane %v179_v7, 6  ;;  %v504_v15 = vperm.slane %v179_v7, 7  ;;  %v209_v41 = vld [vmem:[#allocation6 + $0x38] sm:$0x3] }
  0x33   : > { %v994_v36 = vpack.c.bf16 %v181_v31, %v180_v30  ;;  %217 = vperm.xlu2 %735, %v209_v41   ;;  %s177_s14 = scalar_lea.vmem [#allocation8], %s656_s4  ;;  %s568_s18 = sshll.u32 %s564_s13, 4  ;;  %s569_s18 = int_to_ptr.hbm [resolvable:$true] %s568_s18 }
  0x34   : > { %s566_s15 = sshll.u32 %s177_s14, 4  ;;  %s554_s19 = scalar_lea.sflag [#allocation5], %s980_s29  ;;  %s567_s15 = int_to_ptr.vmem [resolvable:$true] %s566_s15 }
  0x35   : > { %s812_s20 = sshra.s32 %s569_s18, 4  ;;  %s818_s24 = scalar_lea.hbm %s1097_s2, 16  ;;  %s813_s20 = int_to_ptr.hbm [resolvable:$true] %s812_s20 }
  0x36   : > { %s814_s21 = scalar_lea.hbm %s813_s20, 8  ;;  %p819_p12 = scmp.lt.s32.totalorder %s813_s20, %s1097_s2 }
  0x37   : > { %p815_p1 = scmp.ne.s32.totalorder %s813_s20, %s814_s21  ;;  %p820_p8 = scmp.lt.s32.totalorder %s818_s24, %s814_s21 }
  0x38   : > { %205 = vperm.xlu1 %734, %v197_v3  }
  0x39   : > { %193 = vperm.xlu0 %733, %v185_v4   ;;  %v208_v4 = vld [vmem:[#allocation6 + $0x30] sm:$0xff]  ;;  %p816_p3 = pnand %p815_p1, %p949_p13  ;;  %p821_p7 = por %p820_p8, %p819_p12 }
  0x3b   : > { %212 = vperm.xlu2 %735, %v208_v4   ;;  %p817_p5 = pneg %p816_p3 }
  0x3d   : > { %p822_p9 = pnand %p821_p7, %p817_p5 }
  0x40   : > { %224 = vperm.xlu1 %734, %v220_v5  }
  0x41   : > { %229 = vperm.xlu0 %733, %v221_v6  }
  0xa2   : > { %v201_v16 = vpop.permute.xlu1 %200 }
  0xa3   : > { %v189_v17 = vpop.permute.xlu0 %188 }
  0xa4   : > { %v233_v18 = vmul.f32 %v232_v8, %v189_v17  ;;  %v277_v19 = vmul.f32 %v276_v9, %v189_v17  ;;  %v315_v20 = vmul.f32 %v314_v10, %v189_v17  ;;  %v353_v21 = vmul.f32 %v352_v11, %v189_v17 }
  0xa5   : > { %v391_v22 = vmul.f32 %v390_v12, %v189_v17  ;;  %v429_v23 = vmul.f32 %v428_v13, %v189_v17  ;;  %v467_v24 = vmul.f32 %v466_v14, %v189_v17  ;;  %v505_v25 = vmul.f32 %v504_v15, %v189_v17 }
  0xa6   : > { %v235_v26 = vadd.f32 %v233_v18, %v201_v16  ;;  %v279_v27 = vadd.f32 %v277_v19, %v201_v16  ;;  %v317_v28 = vadd.f32 %v315_v20, %v201_v16  ;;  %v355_v29 = vadd.f32 %v353_v21, %v201_v16 }
  0xa7   : > { %v393_v32 = vadd.f32 %v391_v22, %v201_v16  ;;  %v431_v33 = vadd.f32 %v429_v23, %v201_v16  ;;  %v469_v34 = vadd.f32 %v467_v24, %v201_v16  ;;  %v507_v35 = vadd.f32 %v505_v25, %v201_v16  ;;  %v182_v25 = vld [vmem:[#allocation6 + $0x50] sm:$0x1] }
  0xa8   : > { %v237_v37 = vmax.f32 %v235_v26, 0.0  ;;  %v281_v38 = vmax.f32 %v279_v27, 0.0  ;;  %v319_v39 = vmax.f32 %v317_v28, 0.0  ;;  %v357_v40 = vmax.f32 %v355_v29, 0.0  ;;  %671 = vpush %v182_v25  ;;  %v1012_v26 = vpop.permute.xlu2 %217 }
  0xa9   : > { %v395_v43 = vmax.f32 %v393_v32, 0.0  ;;  %v433_v44 = vmax.f32 %v431_v33, 0.0  ;;  %v471_v45 = vmax.f32 %v469_v34, 0.0  ;;  %v509_v46 = vmax.f32 %v507_v35, 0.0 }
  0xaa   : > { %v206_v51 = vpop.permute.xlu1 %205 }
  0xab   : > { %v194_v42 = vpop.permute.xlu0 %193 }
  0xac   : > { %v234_v47 = vmul.f32 %v232_v8, %v194_v42  ;;  %v278_v48 = vmul.f32 %v276_v9, %v194_v42  ;;  %v316_v49 = vmul.f32 %v314_v10, %v194_v42  ;;  %v354_v50 = vmul.f32 %v352_v11, %v194_v42 }
  0xad   : > { %v392_v52 = vmul.f32 %v390_v12, %v194_v42  ;;  %v430_v53 = vmul.f32 %v428_v13, %v194_v42  ;;  %v468_v54 = vmul.f32 %v466_v14, %v194_v42  ;;  %v506_v55 = vmul.f32 %v504_v15, %v194_v42 }
  0xae   : > { %v236_v56 = vadd.f32 %v234_v47, %v206_v51  ;;  %v280_v57 = vadd.f32 %v278_v48, %v206_v51  ;;  %v318_v58 = vadd.f32 %v316_v49, %v206_v51  ;;  %v356_v59 = vadd.f32 %v354_v50, %v206_v51 }
  0xaf   : > { %v394_v60 = vadd.f32 %v392_v52, %v206_v51  ;;  %v432_v61 = vadd.f32 %v430_v53, %v206_v51  ;;  %v470_v62 = vadd.f32 %v468_v54, %v206_v51  ;;  %v508_v63 = vadd.f32 %v506_v55, %v206_v51 }
  0xb0   : > { %v238_v0 = vmax.f32 %v236_v56, 0.0  ;;  %v282_v1 = vmax.f32 %v280_v57, 0.0  ;;  %v320_v2 = vmax.f32 %v318_v58, 0.0  ;;  %v358_v3 = vmax.f32 %v356_v59, 0.0  ;;  %v1014_v29 = vpop.permute.xlu2 %212 }
  0xb1   : > { %v396_v5 = vmax.f32 %v394_v60, 0.0  ;;  %v434_v6 = vmax.f32 %v432_v61, 0.0  ;;  %v472_v7 = vmax.f32 %v470_v62, 0.0  ;;  %v510_v8 = vmax.f32 %v508_v63, 0.0 }
  0xb2   : > { %v239_v9 = vpack.c.bf16 %v238_v0, %v237_v37  ;;  %v283_v10 = vpack.c.bf16 %v282_v1, %v281_v38  ;;  %v321_v11 = vpack.c.bf16 %v320_v2, %v319_v39  ;;  %v359_v12 = vpack.c.bf16 %v358_v3, %v357_v40 }
  0xb3   : > { %v397_v13 = vpack.c.bf16 %v396_v5, %v395_v43  ;;  %v435_v14 = vpack.c.bf16 %v434_v6, %v433_v44  ;;  %v473_v15 = vpack.c.bf16 %v472_v7, %v471_v45  ;;  %v511_v16 = vpack.c.bf16 %v510_v8, %v509_v46  ;;  %v1020_v42 = vpop.permute.xlu0 %229  ;;  %v1022_v43 = vpop.permute.xlu1 %224 }
  0xb4   : > { %v246_v17 = vsel %vm244_vm0, %v239_v9, 0  ;;  %v285_v18 = vsel %vm244_vm0, %v283_v10, 0  ;;  %v323_v19 = vsel %vm244_vm0, %v321_v11, 0  ;;  %v361_v20 = vsel %vm244_vm0, %v359_v12, 0 }
  0xb5   : > { %255 = vmatpush.bf16.msra.mxu0 %v246_v17  ;;  %294 = vmatpush.bf16.msra.mxu1 %v285_v18  ;;  %v399_v21 = vsel %vm244_vm0, %v397_v13, 0  ;;  %v437_v22 = vsel %vm244_vm0, %v435_v14, 0  ;;  %v475_v23 = vsel %vm244_vm0, %v473_v15, 0  ;;  %v513_v24 = vsel %vm244_vm0, %v511_v16, 0 }
  0xb6   : > { %332 = vmatpush.bf16.msra.mxu2 %v323_v19  ;;  %370 = vmatpush.bf16.msra.mxu3 %v361_v20 }
  0xb8   : > { %659 = vmatmul.msk.bf16.vlgmr.msra.gmra.mxu0 %vm240_vm1, %v994_v36  ;;  %660 = vmatmul.msk.bf16.vlgmr.msra.gmra.mxu1 %vm240_vm1, %v994_v36 }
  0xb9   : > { %408 = vmatpush.bf16.msrb.mxu0 %v399_v21  ;;  %446 = vmatpush.bf16.msrb.mxu1 %v437_v22 }
  0xba   : > { %484 = vmatpush.bf16.msrb.mxu2 %v475_v23  ;;  %522 = vmatpush.bf16.msrb.mxu3 %v513_v24 }
  0xbb   : > { %661 = vmatmul.msk.bf16.vlgmr.msra.gmra.mxu2 %vm240_vm1, %v994_v36  ;;  %662 = vmatmul.msk.bf16.vlgmr.msra.gmra.mxu3 %vm240_vm1, %v994_v36 }
  0xc8   : > { %663 = vmatmul.msk.bf16.vlgmr.msrb.gmra.mxu0 %vm240_vm1, %v994_v36  ;;  %664 = vmatmul.msk.bf16.vlgmr.msrb.gmra.mxu1 %vm240_vm1, %v994_v36 }
  0xcb   : > { %665 = vmatmul.msk.bf16.vlgmr.msrb.gmra.mxu2 %vm240_vm1, %v994_v36  ;;  %666 = vmatmul.msk.bf16.vlgmr.msrb.gmra.mxu3 %vm240_vm1, %v994_v36 }
  0xd9   : > { %s672_s17 = spop %671 }
 0x135   : > { %v257_v27 = vpop.f32.mrf.mxu0  ;;  %v296_v28 = vpop.f32.mrf.mxu1 }
 0x136   : > { %v258_v30 = vadd.f32 %v257_v27, %v1014_v29  ;;  %v297_v31 = vadd.f32 %v296_v28, %v1014_v29 }
 0x138   : > { %v262_v38 = vmax.f32 %v258_v30, 0.0  ;;  %v301_v39 = vmax.f32 %v297_v31, 0.0 }
 0x13a   : > { %v264_v48 = vmul.f32 %v262_v38, %v1022_v43  ;;  %v303_v49 = vmul.f32 %v301_v39, %v1022_v43 }
 0x13d   : > { %v259_v34 = vpop.f32.mrf.mxu0  ;;  %v298_v35 = vpop.f32.mrf.mxu1 }
 0x13e   : > { %v334_v32 = vpop.f32.mrf.mxu2  ;;  %v372_v33 = vpop.f32.mrf.mxu3  ;;  %v260_v37 = vadd.f32 %v259_v34, %v1012_v26  ;;  %v299_v36 = vadd.f32 %v298_v35, %v1012_v26 }
 0x13f   : > { %v335_v44 = vadd.f32 %v334_v32, %v1014_v29  ;;  %v373_v45 = vadd.f32 %v372_v33, %v1014_v29 }
 0x140   : > { %v263_v40 = vmax.f32 %v260_v37, 0.0  ;;  %v302_v41 = vmax.f32 %v299_v36, 0.0 }
 0x141   : > { %v339_v60 = vmax.f32 %v335_v44, 0.0  ;;  %v377_v61 = vmax.f32 %v373_v45, 0.0 }
 0x142   : > { %v265_v46 = vmul.f32 %v263_v40, %v1020_v42  ;;  %v304_v47 = vmul.f32 %v302_v41, %v1020_v42 }
 0x143   : > { %v341_v6 = vmul.f32 %v339_v60, %v1022_v43  ;;  %v379_v7 = vmul.f32 %v377_v61, %v1022_v43 }
 0x144   : > { %v267_v50 = vsel %vm266_vm2, %v265_v46, 0.0  ;;  %v305_v51 = vsel %vm266_vm2, %v304_v47, 0.0 }
 0x145   : > { %v268_v54 = vadd.f32 %v267_v50, %v264_v48  ;;  %v306_v55 = vadd.f32 %v305_v51, %v303_v49  ;;  %v410_v58 = vpop.f32.mrf.mxu0  ;;  %v448_v59 = vpop.f32.mrf.mxu1 }
 0x146   : > { %v336_v52 = vpop.f32.mrf.mxu2  ;;  %v374_v53 = vpop.f32.mrf.mxu3  ;;  %v411_v8 = vadd.f32 %v410_v58, %v1014_v29  ;;  %v449_v9 = vadd.f32 %v448_v59, %v1014_v29 }
 0x147   : > { %v337_v56 = vadd.f32 %v336_v52, %v1012_v26  ;;  %v375_v57 = vadd.f32 %v374_v53, %v1012_v26  ;;  %v269_v62 = vrot.slane %v268_v54, 4  ;;  %v307_v63 = vrot.slane %v306_v55, 4 }
 0x148   : > { %v415_v30 = vmax.f32 %v411_v8, 0.0  ;;  %v453_v31 = vmax.f32 %v449_v9, 0.0 }
 0x149   : > { %v340_v0 = vmax.f32 %v337_v56, 0.0  ;;  %v378_v1 = vmax.f32 %v375_v57, 0.0  ;;  %v270_v2 = vadd.f32 %v269_v62, %v268_v54  ;;  %v308_v3 = vadd.f32 %v307_v63, %v306_v55 }
 0x14a   : > { %v417_v46 = vmul.f32 %v415_v30, %v1022_v43  ;;  %v455_v47 = vmul.f32 %v453_v31, %v1022_v43 }
 0x14b   : > { %v342_v4 = vmul.f32 %v340_v0, %v1020_v42  ;;  %v380_v5 = vmul.f32 %v378_v1, %v1020_v42  ;;  %v271_v10 = vrot.slane %v270_v2, 2  ;;  %v309_v11 = vrot.slane %v308_v3, 2 }
 0x14d   : > { %v343_v12 = vsel %vm266_vm2, %v342_v4, 0.0  ;;  %v381_v13 = vsel %vm266_vm2, %v380_v5, 0.0  ;;  %v272_v18 = vadd.f32 %v271_v10, %v270_v2  ;;  %v310_v19 = vadd.f32 %v309_v11, %v308_v3  ;;  %v412_v20 = vpop.f32.mrf.mxu0  ;;  %v450_v21 = vpop.f32.mrf.mxu1 }
 0x14e   : > { %v344_v14 = vadd.f32 %v343_v12, %v341_v6  ;;  %v382_v15 = vadd.f32 %v381_v13, %v379_v7  ;;  %v486_v16 = vpop.f32.mrf.mxu2  ;;  %v524_v17 = vpop.f32.mrf.mxu3  ;;  %v413_v24 = vadd.f32 %v412_v20, %v1012_v26  ;;  %v451_v25 = vadd.f32 %v450_v21, %v1012_v26 }
 0x14f   : > { %v273_v27 = vrot.slane %v272_v18, 1  ;;  %v311_v28 = vrot.slane %v310_v19, 1  ;;  %v487_v38 = vadd.f32 %v486_v16, %v1014_v29  ;;  %v525_v39 = vadd.f32 %v524_v17, %v1014_v29 }
 0x150   : > { %v345_v22 = vrot.slane %v344_v14, 4  ;;  %v383_v23 = vrot.slane %v382_v15, 4  ;;  %v416_v34 = vmax.f32 %v413_v24, 0.0  ;;  %v454_v35 = vmax.f32 %v451_v25, 0.0 }
 0x151   : > { %v274_v37 = vadd.f32 %v273_v27, %v272_v18  ;;  %v312_v36 = vadd.f32 %v311_v28, %v310_v19  ;;  %v491_v59 = vmax.f32 %v487_v38, 0.0  ;;  %v529_v60 = vmax.f32 %v525_v39, 0.0 }
 0x152   : > { %v346_v32 = vadd.f32 %v345_v22, %v344_v14  ;;  %v384_v33 = vadd.f32 %v383_v23, %v382_v15  ;;  %v418_v44 = vmul.f32 %v416_v34, %v1020_v42  ;;  %v456_v45 = vmul.f32 %v454_v35, %v1020_v42 }
 0x153   : > { %275 = vst [vmem:[#allocation2] sm:$0x1] %v274_v37  ;;  %v493_v7 = vmul.f32 %v491_v59, %v1022_v43 }
 0x154   : > { %v347_v40 = vrot.slane %v346_v32, 2  ;;  %v385_v41 = vrot.slane %v384_v33, 2  ;;  %313 = vst [vmem:[#allocation2 + $0x1] sm:$0x1] %v312_v36  ;;  %v419_v50 = vsel %vm266_vm2, %v418_v44, 0.0  ;;  %v457_v51 = vsel %vm266_vm2, %v456_v45, 0.0 }
 0x155   : > { %v420_v53 = vadd.f32 %v419_v50, %v417_v46  ;;  %v458_v54 = vadd.f32 %v457_v51, %v455_v47 }
 0x156   : > { %v348_v48 = vadd.f32 %v347_v40, %v346_v32  ;;  %v386_v49 = vadd.f32 %v385_v41, %v384_v33  ;;  %v488_v52 = vpop.f32.mrf.mxu2  ;;  %v526_v29 = vpop.f32.mrf.mxu3  ;;  %v545_v32 = vstv %s672_s17 }
 0x157   : > { %v489_v55 = vadd.f32 %v488_v52, %v1012_v26  ;;  %v527_v56 = vadd.f32 %v526_v29, %v1012_v26  ;;  %v421_v61 = vrot.slane %v420_v53, 4  ;;  %v459_v62 = vrot.slane %v458_v54, 4 }
 0x158   : > { %v349_v57 = vrot.slane %v348_v48, 1  ;;  %v387_v58 = vrot.slane %v386_v49, 1  ;;  %v531_v26 = vmul.f32 %v529_v60, %v1022_v43 }
 0x159   : > { %v492_v63 = vmax.f32 %v489_v55, 0.0  ;;  %v530_v0 = vmax.f32 %v527_v56, 0.0  ;;  %v422_v3 = vadd.f32 %v421_v61, %v420_v53  ;;  %v460_v4 = vadd.f32 %v459_v62, %v458_v54 }
 0x15a   : > { %v350_v1 = vadd.f32 %v349_v57, %v348_v48  ;;  %v388_v2 = vadd.f32 %v387_v58, %v386_v49 }
 0x15b   : > { %v494_v5 = vmul.f32 %v492_v63, %v1020_v42  ;;  %v532_v6 = vmul.f32 %v530_v0, %v1020_v42  ;;  %v423_v8 = vrot.slane %v422_v3, 2  ;;  %v461_v9 = vrot.slane %v460_v4, 2 }
 0x15c   : > { %351 = vst [vmem:[#allocation2 + $0x2] sm:$0x1] %v350_v1 }
 0x15d   : > { %389 = vst [vmem:[#allocation2 + $0x3] sm:$0x1] %v388_v2  ;;  %v495_v10 = vsel %vm266_vm2, %v494_v5, 0.0  ;;  %v533_v11 = vsel %vm266_vm2, %v532_v6, 0.0  ;;  %v424_v14 = vadd.f32 %v423_v8, %v422_v3  ;;  %v462_v15 = vadd.f32 %v461_v9, %v460_v4 }
 0x15e   : > { %v496_v12 = vadd.f32 %v495_v10, %v493_v7  ;;  %v534_v13 = vadd.f32 %v533_v11, %v531_v26 }
 0x15f   : > { %v425_v18 = vrot.slane %v424_v14, 1  ;;  %v463_v42 = vrot.slane %v462_v15, 1 }
 0x160   : > { %v497_v16 = vrot.slane %v496_v12, 4  ;;  %v535_v17 = vrot.slane %v534_v13, 4 }
 0x161   : > { %v426_v21 = vadd.f32 %v425_v18, %v424_v14  ;;  %v464_v22 = vadd.f32 %v463_v42, %v462_v15 }
 0x162   : > { %v498_v19 = vadd.f32 %v497_v16, %v496_v12  ;;  %v536_v20 = vadd.f32 %v535_v17, %v534_v13 }
 0x163   : > { %427 = vst [vmem:[#allocation2 + $0x4] sm:$0x1] %v426_v21 }
 0x164   : > { %v499_v43 = vrot.slane %v498_v19, 2  ;;  %v537_v23 = vrot.slane %v536_v20, 2  ;;  %465 = vst [vmem:[#allocation2 + $0x5] sm:$0x1] %v464_v22 }
 0x166   : > { %v500_v24 = vadd.f32 %v499_v43, %v498_v19  ;;  %v538_v25 = vadd.f32 %v537_v23, %v536_v20 }
 0x168   : > { %v501_v27 = vrot.slane %v500_v24, 1  ;;  %v539_v28 = vrot.slane %v538_v25, 1 }
 0x16a   : > { %v502_v30 = vadd.f32 %v501_v27, %v500_v24  ;;  %v540_v31 = vadd.f32 %v539_v28, %v538_v25 }
 0x16c   : > { %503 = vst [vmem:[#allocation2 + $0x6] sm:$0x1] %v502_v30 }
 0x16d   : > { %541 = vst [vmem:[#allocation2 + $0x7] sm:$0x1] %v540_v31 }
 0x174   : > { %v542_v33 = vld [vmem:[#allocation2] sm:$0xff] }
 0x175   : > { %v547_v34 = vadd.f32 %v545_v32, %v542_v33 }
 0x177   : > { %v548_v35 = vmul.f32 0.5, %v547_v34 }
 0x179   : > { %736 = vtanh.f32 %v548_v35 }
 0x17f   : > { %v737_v37 = vpop.eup %736 }
 0x180   : > { %v550_v36 = vmul.f32 0.5, %v737_v37 }
 0x182   : > { %v551_v38 = vadd.f32 0.5, %v550_v36 }
 0x184   : > { %552 = vst [vmem:[%s177_s14] sm:$0xff] %v551_v38 }
 0x185   : > { %825 = shalt.err (!%p822_p9)
}
 0x186   : > { %679 = dma.vmem_to_hbm [thread:$0]  (%p949_p13), %s567_s15, 128, %s569_s18, %s554_s19  }
 0x187 PF: > { %s580_s29 = sand.u32 1, %s856_s9   ;;  %p1103_p10 = scmp.ge.s32.totalorder %s868_s12, 2 }
 0x188   : > { %s581_s4 = scalar_lea.sflag [#allocation5], %s580_s29 }
 0x189   : > { %p690_p11 = pnand %p1103_p10, %p954_p4 }
 0x18b   : > { %p691_p0 = pneg %p690_p11 }
 0x18d   : > { %851 = dma.done.wait (%p691_p0), %s581_s4, 128  }
 0x18e   : > { %853 = vsyncadd (%p691_p0), %s581_s4, 4294967168  ;;  %p16_p2 = scmp.ge.s32.totalorder %s929_s23, 4   ;;  %s1104_s9 = smov %s860_s10 }
 0x18f   : > { %s1105_s10 = smov %s864_s11  ;;  %s1106_s11 = smov %s941_s26 }
 0x190   : > { %s1107_s12 = smov %s929_s23  ;;  %18 = sbr.rel (!%p16_p2) target bundleno = 6 (0x6), region = 77 }
 0x195   :  { %587 = vsyncpa [#allocation4], 1 }
 0x196   :  { %589 = vsyncpa [#allocation4 + $0x1], 1 }
 0x197   :  { %590 = vsyncpa [#allocation7], 1 }
 0x198   :  { %591 = vsyncpa [#allocation5], 1 }
 0x199   :  { %593 = vsyncpa [#allocation5 + $0x1], 1 }

</bundles_post_ra>
